<compile_context>
chip_gen: v7x
topology: tpu7x:2x2x1
jax: 0.10.0
libtpu: 0.0.40
codegen_flags: <defaults>
</compile_context>

<pallas_src>
import functools

import jax
import jax.numpy as jnp
from jax.experimental import pallas as pl
from jax.experimental.pallas import tpu as pltpu


def _round_up(v, m):
    return (v + m - 1) // m * m


def _rt1_head_kernel(x_ref, w1_ref, b1_ref, w2_ref, b2_ref, w3_ref, b3_ref,
                     wb_ref, bb_ref, scale_ref, amin_ref,
                     logits_ref, cont_ref, *, A, K):
    """One row-tile of the RT1 head.

    x_ref:      [TM, D]     row tile of flattened (N*T) tokens (f32)
    w1/2/3_ref: [in, out]   share-MLP weights (f32 or bf16)
    wb_ref:     [H, A*K]    bin-head weight (f32, keeps argmax bins stable)
    b*_ref:     [1, out]    biases (f32)
    scale_ref:  [1, A]      (action_max - action_min) / (nbins - 1)
    amin_ref:   [1, A]      action_min
    logits_ref: [TM, A*K]   output bin logits tile (f32 or bf16 store)
    cont_ref:   [TM, A]     output continuous actions tile (f32)
    """

    def dense(v, w_ref, b_ref):
        # Cast the activation to the weight dtype (no-op for f32 weights) so
        # the MXU sees matched operands; accumulate in f32 either way.
        return jnp.dot(v.astype(w_ref.dtype), w_ref[...],
                       preferred_element_type=jnp.float32) + b_ref[...]

    x = x_ref[...]
    h = jnp.maximum(dense(x, w1_ref, b1_ref), 0.0)
    h = jnp.maximum(dense(h, w2_ref, b2_ref), 0.0)
    feat = dense(h, w3_ref, b3_ref)

    # bin head (f32 matmul -> f32 logits; argmax is computed on these values).
    logits = dense(feat, wb_ref, bb_ref)                      # [TM, A*K] f32
    tm = logits.shape[0]

    # discrete_to_continuous: per-action-dim argmax on 128-lane-aligned static
    # slices (K is a multiple of 128 -> free views, no reshape relayout).
    # First-max argmax via max + iota + where + min (matches jnp.argmax).
    lane = jax.lax.broadcasted_iota(jnp.int32, (tm, K), 1)    # hoisted out of loop
    cols = []
    for a in range(A):      # A is a small static int; unrolled at trace time
        sl = logits[:, a * K:(a + 1) * K]                     # [TM, K] view
        m = jnp.max(sl, axis=-1, keepdims=True)               # [TM, 1]
        cand = jnp.where(sl == m, lane, K)                    # K = sentinel
        cols.append(jnp.min(cand, axis=-1, keepdims=True).astype(jnp.float32))
    idx = jnp.concatenate(cols, axis=-1)                      # [TM, A]
    cont_ref[...] = idx * scale_ref[...] + amin_ref[...]

    # Store logits AFTER the argmax: if a bf16 logits output was requested
    # (halves the dominant HBM writeback), cont is still derived from the
    # full-precision values and is unchanged.
    logits_ref[...] = logits.astype(logits_ref.dtype)


def rt1_head_forward(x, params, *, output_size, nbins, block_m=1024,
                     logits_dtype=jnp.float32, mlp_bf16=False):
    """x: [N, T, D]. Returns (cont [N,T,A] f32, logits [N,T,A,K] logits_dtype)."""
    N, T, D = x.shape
    A, K = output_size, nbins
    H = params["w1"].shape[1]
    M = N * T

    logits_dtype = jnp.dtype(logits_dtype)
    mlp_dtype = jnp.bfloat16 if mlp_bf16 else jnp.float32

    x2d = x.reshape(M, D).astype(jnp.float32)

    # Share-MLP weights optionally bf16 (native MXU path, f32 accumulate);
    # bin-head weight and all biases stay f32 so the argmax bins are stable.
    w1 = params["w1"].astype(mlp_dtype)
    w2 = params["w2"].astype(mlp_dtype)
    w3 = params["w3"].astype(mlp_dtype)
    wb = params["wb"].astype(jnp.float32)
    b1 = params["b1"].astype(jnp.float32)
    b2 = params["b2"].astype(jnp.float32)
    b3 = params["b3"].astype(jnp.float32)
    bb = params["bb"].astype(jnp.float32)

    # Hoisted rescale factor (one fewer per-element sub/div inside the kernel).
    scale = ((params["action_max"] - params["action_min"]) / float(K - 1)
             ).astype(jnp.float32)
    amin = params["action_min"].astype(jnp.float32)

    # Row alignment: 8 sublanes for f32 tiles, 16 when the logits tile is bf16.
    row_align = 16 if logits_dtype == jnp.dtype(jnp.bfloat16) else 8

    # Row tiling: aim for >= 2 grid steps whenever M allows so both v7x
    # TensorCores get work under dimension_semantics=("parallel",); cap at
    # block_m; then shrink if double-buffered tiles would overflow VMEM.
    Mp0 = _round_up(M, row_align)
    half = -(-Mp0 // 2)
    TM = max(row_align, min(block_m, _round_up(half, row_align)))

    operands = (w1, b1, w2, b2, w3, b3, wb, bb, scale, amin)
    w_bytes = sum(int(a.size) * a.dtype.itemsize for a in operands)

    def vmem_est(tm):
        io = (2 * tm * D * 4                               # x tile (dbl-buffered)
              + 2 * tm * A * K * logits_dtype.itemsize     # logits tile
              + 2 * tm * A * 4)                            # cont tile
        return 2 * w_bytes + io + (2 << 20)                # weights + slack

    vmem_budget = 48 * 1024 * 1024
    while TM > row_align and vmem_est(TM) > vmem_budget:
        TM = max(row_align, _round_up(TM // 2, row_align))

    Mp = _round_up(Mp0, TM)
    if Mp != M:
        x2d = jnp.pad(x2d, ((0, Mp - M), (0, 0)))
    grid = (Mp // TM,)

    vmem_limit = int(min(max(vmem_est(TM), 32 * 1024 * 1024), 64 * 1024 * 1024))

    def row_spec(width):
        return pl.BlockSpec((TM, width), lambda i: (i, 0))

    def fixed_spec(shape):
        return pl.BlockSpec(shape, lambda i: (0, 0))

    kernel = functools.partial(_rt1_head_kernel, A=A, K=K)

    logits2d, cont2d = pl.pallas_call(
        kernel,
        out_shape=(
            jax.ShapeDtypeStruct((Mp, A * K), logits_dtype),
            jax.ShapeDtypeStruct((Mp, A), jnp.float32),
        ),
        grid=grid,
        in_specs=[
            row_spec(D),
            fixed_spec((D, H)), fixed_spec((1, H)),
            fixed_spec((H, H)), fixed_spec((1, H)),
            fixed_spec((H, H)), fixed_spec((1, H)),
            fixed_spec((H, A * K)), fixed_spec((1, A * K)),
            fixed_spec((1, A)), fixed_spec((1, A)),
        ],
        out_specs=(row_spec(A * K), row_spec(A)),
        compiler_params=pltpu.CompilerParams(
            dimension_semantics=("parallel",),
            vmem_limit_bytes=vmem_limit),
    )(x2d, *operands)

    logits = logits2d[:M].reshape(N, T, A, K)
    cont = cont2d[:M].reshape(N, T, A)
    return cont, logits


def init_params(key, input_size, hidden_size, output_size, nbins):
    """Deterministic synthetic parameters (PyTorch-Linear shapes, pre-transposed)."""
    ks = jax.random.split(key, 8)
    s = 0.05
    params = {
        "w1": s * jax.random.normal(ks[0], (input_size, hidden_size), jnp.float32),
        "b1": s * jax.random.normal(ks[1], (1, hidden_size), jnp.float32),
        "w2": s * jax.random.normal(ks[2], (hidden_size, hidden_size), jnp.float32),
        "b2": s * jax.random.normal(ks[3], (1, hidden_size), jnp.float32),
        "w3": s * jax.random.normal(ks[4], (hidden_size, hidden_size), jnp.float32),
        "b3": s * jax.random.normal(ks[5], (1, hidden_size), jnp.float32),
        "wb": s * jax.random.normal(ks[6], (hidden_size, output_size * nbins), jnp.float32),
        "bb": s * jax.random.normal(ks[7], (1, output_size * nbins), jnp.float32),
    }
    # Synthetic per-action range standing in for the stats pickle of the module.
    # TODO(synk): real module loads action_max/action_min from a stats pickle on disk.
    amin = -1.0 + 0.1 * jnp.arange(output_size, dtype=jnp.float32).reshape(1, output_size)
    amax = 1.0 + 0.1 * jnp.arange(output_size, dtype=jnp.float32).reshape(1, output_size)
    params["action_max"] = amax
    params["action_min"] = amin
    return params


def _reference_forward(x, params, *, output_size, nbins):
    """Pure-JAX reference for correctness checking."""
    N, T, D = x.shape
    h = jnp.maximum(x @ params["w1"] + params["b1"][0], 0.0)
    h = jnp.maximum(h @ params["w2"] + params["b2"][0], 0.0)
    feat = h @ params["w3"] + params["b3"][0]
    logits = feat @ params["wb"] + params["bb"][0]
    logits = logits.reshape(N, T, output_size, nbins)
    idx = jnp.argmax(logits, axis=-1).astype(jnp.float32)
    amax = params["action_max"][0]
    amin = params["action_min"][0]
    cont = idx / (nbins - 1) * (amax - amin) + amin
    return cont, logits


if __name__ == "__main__":
    # Small shapes consistent with the module's forward:
    #   x: [N, T, input_size], hidden_size, output_size action dims, nbins bins.
    N, T = 2, 8
    input_size, hidden_size = 32, 32
    output_size, nbins = 4, 128

    key = jax.random.PRNGKey(0)
    pkey, xkey = jax.random.split(key)
    params = init_params(pkey, input_size, hidden_size, output_size, nbins)
    x = jax.random.normal(xkey, (N, T, input_size), jnp.float32)

    # Exact-semantics path (f32 end to end), checked tightly vs pure-JAX ref.
    cont, logits = rt1_head_forward(x, params, output_size=output_size, nbins=nbins)
    cont, logits = jax.block_until_ready((cont, logits))
    ref_cont, ref_logits = _reference_forward(x, params,
                                              output_size=output_size, nbins=nbins)
    assert cont.shape == (N, T, output_size)
    assert logits.shape == (N, T, output_size, nbins)
    assert jnp.allclose(logits, ref_logits, atol=1e-4, rtol=1e-4)
    assert jnp.allclose(cont, ref_cont, atol=1e-4, rtol=1e-4)

    # Memory/MXU-optimized path: bf16 logits store (halves the dominant HBM
    # writeback) + bf16 share-MLP matmuls (v7x MXU fast path).  cont is still
    # derived from the f32 logits before the downcast.
    cont_b, logits_b = rt1_head_forward(
        x, params, output_size=output_size, nbins=nbins,
        logits_dtype=jnp.bfloat16, mlp_bf16=True)
    cont_b, logits_b = jax.block_until_ready((cont_b, logits_b))
    assert cont_b.shape == (N, T, output_size) and cont_b.dtype == jnp.float32
    assert logits_b.shape == (N, T, output_size, nbins)
    assert logits_b.dtype == jnp.bfloat16
    assert bool(jnp.isfinite(cont_b).all())
    assert jnp.allclose(logits_b.astype(jnp.float32), ref_logits,
                        atol=5e-2, rtol=5e-2)

    print("KERNEL_OK")
</pallas_src>

<mosaic_0001>
module attributes {stable_mosaic.version = 11 : i64} {
  func.func @_rt1_head_kernel(%arg0: i32, %arg1: memref<8x32xf32, #tpu.memory_space<vmem>>, %arg2: memref<32x32xf32, #tpu.memory_space<vmem>>, %arg3: memref<1x32xf32, #tpu.memory_space<vmem>>, %arg4: memref<32x32xf32, #tpu.memory_space<vmem>>, %arg5: memref<1x32xf32, #tpu.memory_space<vmem>>, %arg6: memref<32x32xf32, #tpu.memory_space<vmem>>, %arg7: memref<1x32xf32, #tpu.memory_space<vmem>>, %arg8: memref<32x512xf32, #tpu.memory_space<vmem>>, %arg9: memref<1x512xf32, #tpu.memory_space<vmem>>, %arg10: memref<1x4xf32, #tpu.memory_space<vmem>>, %arg11: memref<1x4xf32, #tpu.memory_space<vmem>>, %arg12: memref<8x512xf32, #tpu.memory_space<vmem>>, %arg13: memref<8x4xf32, #tpu.memory_space<vmem>>) attributes {dimension_semantics = [#tpu.dimension_semantics<parallel>], iteration_bounds = array<i64: 2>, scalar_prefetch = 0 : i64, scratch_operands = 0 : i64, tpu.core_type = #tpu.core_type<tc>, window_params = [{transform_indices = @transform_0, window_bounds = array<i64: 8, 32>}, {pipeline_mode = #tpu.pipeline_mode<synchronous>, transform_indices = @transform_1, window_bounds = array<i64: 32, 32>}, {pipeline_mode = #tpu.pipeline_mode<synchronous>, transform_indices = @transform_2, window_bounds = array<i64: 1, 32>}, {pipeline_mode = #tpu.pipeline_mode<synchronous>, transform_indices = @transform_3, window_bounds = array<i64: 32, 32>}, {pipeline_mode = #tpu.pipeline_mode<synchronous>, transform_indices = @transform_4, window_bounds = array<i64: 1, 32>}, {pipeline_mode = #tpu.pipeline_mode<synchronous>, transform_indices = @transform_5, window_bounds = array<i64: 32, 32>}, {pipeline_mode = #tpu.pipeline_mode<synchronous>, transform_indices = @transform_6, window_bounds = array<i64: 1, 32>}, {pipeline_mode = #tpu.pipeline_mode<synchronous>, transform_indices = @transform_7, window_bounds = array<i64: 32, 512>}, {pipeline_mode = #tpu.pipeline_mode<synchronous>, transform_indices = @transform_8, window_bounds = array<i64: 1, 512>}, {pipeline_mode = #tpu.pipeline_mode<synchronous>, transform_indices = @transform_9, window_bounds = array<i64: 1, 4>}, {pipeline_mode = #tpu.pipeline_mode<synchronous>, transform_indices = @transform_10, window_bounds = array<i64: 1, 4>}, {transform_indices = @transform_11, window_bounds = array<i64: 8, 512>}, {transform_indices = @transform_12, window_bounds = array<i64: 8, 4>}]} {
    %c0 = arith.constant 0 : index
    %c0_0 = arith.constant 0 : index
    %0 = vector.load %arg1[%c0, %c0_0] : memref<8x32xf32, #tpu.memory_space<vmem>>, vector<8x32xf32>
    %c0_1 = arith.constant 0 : index
    %c0_2 = arith.constant 0 : index
    %1 = vector.load %arg2[%c0_1, %c0_2] : memref<32x32xf32, #tpu.memory_space<vmem>>, vector<32x32xf32>
    %cst = arith.constant dense<0.000000e+00> : vector<8x32xf32>
    %2 = tpu.matmul %0, %1, %cst {dimension_numbers = #tpu.dot_dimension_numbers<[1], [0], [0], [1], [0, 0, 1, 1], [], []>} : vector<8x32xf32>, vector<32x32xf32>, vector<8x32xf32> -> vector<8x32xf32>
    %c0_3 = arith.constant 0 : index
    %c0_4 = arith.constant 0 : index
    %3 = vector.load %arg3[%c0_3, %c0_4] : memref<1x32xf32, #tpu.memory_space<vmem>>, vector<1x32xf32>
    %4 = vector.broadcast %3 : vector<1x32xf32> to vector<8x32xf32>
    %5 = arith.addf %2, %4 : vector<8x32xf32>
    %cst_5 = arith.constant 0.000000e+00 : f32
    %6 = vector.broadcast %cst_5 : f32 to vector<8x32xf32>
    %7 = arith.maximumf %5, %6 : vector<8x32xf32>
    %c0_6 = arith.constant 0 : index
    %c0_7 = arith.constant 0 : index
    %8 = vector.load %arg4[%c0_6, %c0_7] : memref<32x32xf32, #tpu.memory_space<vmem>>, vector<32x32xf32>
    %cst_8 = arith.constant dense<0.000000e+00> : vector<8x32xf32>
    %9 = tpu.matmul %7, %8, %cst_8 {dimension_numbers = #tpu.dot_dimension_numbers<[1], [0], [0], [1], [0, 0, 1, 1], [], []>} : vector<8x32xf32>, vector<32x32xf32>, vector<8x32xf32> -> vector<8x32xf32>
    %c0_9 = arith.constant 0 : index
    %c0_10 = arith.constant 0 : index
    %10 = vector.load %arg5[%c0_9, %c0_10] : memref<1x32xf32, #tpu.memory_space<vmem>>, vector<1x32xf32>
    %11 = vector.broadcast %10 : vector<1x32xf32> to vector<8x32xf32>
    %12 = arith.addf %9, %11 : vector<8x32xf32>
    %cst_11 = arith.constant 0.000000e+00 : f32
    %13 = vector.broadcast %cst_11 : f32 to vector<8x32xf32>
    %14 = arith.maximumf %12, %13 : vector<8x32xf32>
    %c0_12 = arith.constant 0 : index
    %c0_13 = arith.constant 0 : index
    %15 = vector.load %arg6[%c0_12, %c0_13] : memref<32x32xf32, #tpu.memory_space<vmem>>, vector<32x32xf32>
    %cst_14 = arith.constant dense<0.000000e+00> : vector<8x32xf32>
    %16 = tpu.matmul %14, %15, %cst_14 {dimension_numbers = #tpu.dot_dimension_numbers<[1], [0], [0], [1], [0, 0, 1, 1], [], []>} : vector<8x32xf32>, vector<32x32xf32>, vector<8x32xf32> -> vector<8x32xf32>
    %c0_15 = arith.constant 0 : index
    %c0_16 = arith.constant 0 : index
    %17 = vector.load %arg7[%c0_15, %c0_16] : memref<1x32xf32, #tpu.memory_space<vmem>>, vector<1x32xf32>
    %18 = vector.broadcast %17 : vector<1x32xf32> to vector<8x32xf32>
    %19 = arith.addf %16, %18 : vector<8x32xf32>
    %c0_17 = arith.constant 0 : index
    %c0_18 = arith.constant 0 : index
    %20 = vector.load %arg8[%c0_17, %c0_18] : memref<32x512xf32, #tpu.memory_space<vmem>>, vector<32x512xf32>
    %cst_19 = arith.constant dense<0.000000e+00> : vector<8x512xf32>
    %21 = tpu.matmul %19, %20, %cst_19 {dimension_numbers = #tpu.dot_dimension_numbers<[1], [0], [0], [1], [0, 0, 1, 1], [], []>} : vector<8x32xf32>, vector<32x512xf32>, vector<8x512xf32> -> vector<8x512xf32>
    %c0_20 = arith.constant 0 : index
    %c0_21 = arith.constant 0 : index
    %22 = vector.load %arg9[%c0_20, %c0_21] : memref<1x512xf32, #tpu.memory_space<vmem>>, vector<1x512xf32>
    %23 = vector.broadcast %22 : vector<1x512xf32> to vector<8x512xf32>
    %24 = arith.addf %21, %23 : vector<8x512xf32>
    %25 = tpu.iota {dimensions = array<i32: 1>} : vector<8x128xi32>
    %26 = vector.extract_strided_slice %24 {offsets = [0, 0], sizes = [8, 128], strides = [1, 1]} : vector<8x512xf32> to vector<8x128xf32>
    %cst_22 = arith.constant dense<0xFF800000> : vector<8xf32>
    %27 = vector.multi_reduction <maximumf>, %26, %cst_22 [1] : vector<8x128xf32> to vector<8xf32>
    %28 = vector.shape_cast %27 : vector<8xf32> to vector<8x1xf32>
    %29 = vector.broadcast %28 : vector<8x1xf32> to vector<8x128xf32>
    %30 = arith.cmpf oeq, %26, %29 : vector<8x128xf32>
    %c128_i32 = arith.constant 128 : i32
    %31 = vector.broadcast %c128_i32 : i32 to vector<8x128xi32>
    %32 = arith.select %30, %25, %31 : vector<8x128xi1>, vector<8x128xi32>
    %cst_23 = arith.constant dense<2147483647> : vector<8xi32>
    %33 = vector.multi_reduction <minsi>, %32, %cst_23 [1] : vector<8x128xi32> to vector<8xi32>
    %34 = vector.shape_cast %33 : vector<8xi32> to vector<8x1xi32>
    %35 = arith.sitofp %34 : vector<8x1xi32> to vector<8x1xf32>
    %36 = vector.extract_strided_slice %24 {offsets = [0, 128], sizes = [8, 128], strides = [1, 1]} : vector<8x512xf32> to vector<8x128xf32>
    %cst_24 = arith.constant dense<0xFF800000> : vector<8xf32>
    %37 = vector.multi_reduction <maximumf>, %36, %cst_24 [1] : vector<8x128xf32> to vector<8xf32>
    %38 = vector.shape_cast %37 : vector<8xf32> to vector<8x1xf32>
    %39 = vector.broadcast %38 : vector<8x1xf32> to vector<8x128xf32>
    %40 = arith.cmpf oeq, %36, %39 : vector<8x128xf32>
    %c128_i32_25 = arith.constant 128 : i32
    %41 = vector.broadcast %c128_i32_25 : i32 to vector<8x128xi32>
    %42 = arith.select %40, %25, %41 : vector<8x128xi1>, vector<8x128xi32>
    %cst_26 = arith.constant dense<2147483647> : vector<8xi32>
    %43 = vector.multi_reduction <minsi>, %42, %cst_26 [1] : vector<8x128xi32> to vector<8xi32>
    %44 = vector.shape_cast %43 : vector<8xi32> to vector<8x1xi32>
    %45 = arith.sitofp %44 : vector<8x1xi32> to vector<8x1xf32>
    %46 = vector.extract_strided_slice %24 {offsets = [0, 256], sizes = [8, 128], strides = [1, 1]} : vector<8x512xf32> to vector<8x128xf32>
    %cst_27 = arith.constant dense<0xFF800000> : vector<8xf32>
    %47 = vector.multi_reduction <maximumf>, %46, %cst_27 [1] : vector<8x128xf32> to vector<8xf32>
    %48 = vector.shape_cast %47 : vector<8xf32> to vector<8x1xf32>
    %49 = vector.broadcast %48 : vector<8x1xf32> to vector<8x128xf32>
    %50 = arith.cmpf oeq, %46, %49 : vector<8x128xf32>
    %c128_i32_28 = arith.constant 128 : i32
    %51 = vector.broadcast %c128_i32_28 : i32 to vector<8x128xi32>
    %52 = arith.select %50, %25, %51 : vector<8x128xi1>, vector<8x128xi32>
    %cst_29 = arith.constant dense<2147483647> : vector<8xi32>
    %53 = vector.multi_reduction <minsi>, %52, %cst_29 [1] : vector<8x128xi32> to vector<8xi32>
    %54 = vector.shape_cast %53 : vector<8xi32> to vector<8x1xi32>
    %55 = arith.sitofp %54 : vector<8x1xi32> to vector<8x1xf32>
    %56 = vector.extract_strided_slice %24 {offsets = [0, 384], sizes = [8, 128], strides = [1, 1]} : vector<8x512xf32> to vector<8x128xf32>
    %cst_30 = arith.constant dense<0xFF800000> : vector<8xf32>
    %57 = vector.multi_reduction <maximumf>, %56, %cst_30 [1] : vector<8x128xf32> to vector<8xf32>
    %58 = vector.shape_cast %57 : vector<8xf32> to vector<8x1xf32>
    %59 = vector.broadcast %58 : vector<8x1xf32> to vector<8x128xf32>
    %60 = arith.cmpf oeq, %56, %59 : vector<8x128xf32>
    %c128_i32_31 = arith.constant 128 : i32
    %61 = vector.broadcast %c128_i32_31 : i32 to vector<8x128xi32>
    %62 = arith.select %60, %25, %61 : vector<8x128xi1>, vector<8x128xi32>
    %cst_32 = arith.constant dense<2147483647> : vector<8xi32>
    %63 = vector.multi_reduction <minsi>, %62, %cst_32 [1] : vector<8x128xi32> to vector<8xi32>
    %64 = vector.shape_cast %63 : vector<8xi32> to vector<8x1xi32>
    %65 = arith.sitofp %64 : vector<8x1xi32> to vector<8x1xf32>
    %66 = tpu.concatenate %35, %45, %55, %65 in 1 : vector<8x1xf32>, vector<8x1xf32>, vector<8x1xf32>, vector<8x1xf32> -> vector<8x4xf32>
    %c0_33 = arith.constant 0 : index
    %c0_34 = arith.constant 0 : index
    %67 = vector.load %arg10[%c0_33, %c0_34] : memref<1x4xf32, #tpu.memory_space<vmem>>, vector<1x4xf32>
    %68 = vector.broadcast %67 : vector<1x4xf32> to vector<8x4xf32>
    %69 = arith.mulf %66, %68 : vector<8x4xf32>
    %c0_35 = arith.constant 0 : index
    %c0_36 = arith.constant 0 : index
    %70 = vector.load %arg11[%c0_35, %c0_36] : memref<1x4xf32, #tpu.memory_space<vmem>>, vector<1x4xf32>
    %71 = vector.broadcast %70 : vector<1x4xf32> to vector<8x4xf32>
    %72 = arith.addf %69, %71 : vector<8x4xf32>
    %c0_37 = arith.constant 0 : index
    %c0_38 = arith.constant 0 : index
    %73 = vector.load %arg13[%c0_37, %c0_38] : memref<8x4xf32, #tpu.memory_space<vmem>>, vector<8x4xf32>
    tpu.vector_store %arg13[%c0_37, %c0_38], %72 {strides = array<i32>} : memref<8x4xf32, #tpu.memory_space<vmem>>, vector<8x4xf32>,
    %c0_39 = arith.constant 0 : index
    %c0_40 = arith.constant 0 : index
    %74 = vector.load %arg12[%c0_39, %c0_40] : memref<8x512xf32, #tpu.memory_space<vmem>>, vector<8x512xf32>
    tpu.vector_store %arg12[%c0_39, %c0_40], %24 {strides = array<i32>} : memref<8x512xf32, #tpu.memory_space<vmem>>, vector<8x512xf32>,
    return
  }
  func.func @transform_0(%arg0: i32) -> (i32, i32) {
    %c0_i32 = arith.constant 0 : i32
    %c0_i32_0 = arith.constant 0 : i32
    return %arg0, %c0_i32 : i32, i32
  }
  func.func @transform_1(%arg0: i32) -> (i32, i32) {
    %c0_i32 = arith.constant 0 : i32
    %c0_i32_0 = arith.constant 0 : i32
    %c0_i32_1 = arith.constant 0 : i32
    return %c0_i32, %c0_i32_0 : i32, i32
  }
  func.func @transform_2(%arg0: i32) -> (i32, i32) {
    %c0_i32 = arith.constant 0 : i32
    %c0_i32_0 = arith.constant 0 : i32
    %c0_i32_1 = arith.constant 0 : i32
    return %c0_i32, %c0_i32_0 : i32, i32
  }
  func.func @transform_3(%arg0: i32) -> (i32, i32) {
    %c0_i32 = arith.constant 0 : i32
    %c0_i32_0 = arith.constant 0 : i32
    %c0_i32_1 = arith.constant 0 : i32
    return %c0_i32, %c0_i32_0 : i32, i32
  }
  func.func @transform_4(%arg0: i32) -> (i32, i32) {
    %c0_i32 = arith.constant 0 : i32
    %c0_i32_0 = arith.constant 0 : i32
    %c0_i32_1 = arith.constant 0 : i32
    return %c0_i32, %c0_i32_0 : i32, i32
  }
  func.func @transform_5(%arg0: i32) -> (i32, i32) {
    %c0_i32 = arith.constant 0 : i32
    %c0_i32_0 = arith.constant 0 : i32
    %c0_i32_1 = arith.constant 0 : i32
    return %c0_i32, %c0_i32_0 : i32, i32
  }
  func.func @transform_6(%arg0: i32) -> (i32, i32) {
    %c0_i32 = arith.constant 0 : i32
    %c0_i32_0 = arith.constant 0 : i32
    %c0_i32_1 = arith.constant 0 : i32
    return %c0_i32, %c0_i32_0 : i32, i32
  }
  func.func @transform_7(%arg0: i32) -> (i32, i32) {
    %c0_i32 = arith.constant 0 : i32
    %c0_i32_0 = arith.constant 0 : i32
    %c0_i32_1 = arith.constant 0 : i32
    return %c0_i32, %c0_i32_0 : i32, i32
  }
  func.func @transform_8(%arg0: i32) -> (i32, i32) {
    %c0_i32 = arith.constant 0 : i32
    %c0_i32_0 = arith.constant 0 : i32
    %c0_i32_1 = arith.constant 0 : i32
    return %c0_i32, %c0_i32_0 : i32, i32
  }
  func.func @transform_9(%arg0: i32) -> (i32, i32) {
    %c0_i32 = arith.constant 0 : i32
    %c0_i32_0 = arith.constant 0 : i32
    %c0_i32_1 = arith.constant 0 : i32
    return %c0_i32, %c0_i32_0 : i32, i32
  }
  func.func @transform_10(%arg0: i32) -> (i32, i32) {
    %c0_i32 = arith.constant 0 : i32
    %c0_i32_0 = arith.constant 0 : i32
    %c0_i32_1 = arith.constant 0 : i32
    return %c0_i32, %c0_i32_0 : i32, i32
  }
  func.func @transform_11(%arg0: i32) -> (i32, i32) {
    %c0_i32 = arith.constant 0 : i32
    %c0_i32_0 = arith.constant 0 : i32
    return %arg0, %c0_i32 : i32, i32
  }
  func.func @transform_12(%arg0: i32) -> (i32, i32) {
    %c0_i32 = arith.constant 0 : i32
    %c0_i32_0 = arith.constant 0 : i32
    return %arg0, %c0_i32 : i32, i32
  }
}

</mosaic_0001>

<bundles_post_ra>
// kernel: tpu_custom_call.1
= control target key start
LH: loop header
LB: loop body
LE: loop exit
PB: predicated region body
PF: predicated region fallthrough
CT: control target
= control target key end

     0   :  { %s2029_s0 = inlined_call_operand.hbm [shape: f32[16,32], index: 0, kind: input, shape index: {}]   ;;  %s2030_s1 = inlined_call_operand.hbm [shape: f32[32,32], index: 1, kind: input, shape index: {}]   ;;  %s2031_s2 = inlined_call_operand.vmem [shape: f32[1,32], index: 2, kind: input, shape index: {}]   ;;  %s2032_s3 = inlined_call_operand.hbm [shape: f32[32,32], index: 3, kind: input, shape index: {}]   ;;  %s2033_s4 = inlined_call_operand.vmem [shape: f32[1,32], index: 4, kind: input, shape index: {}]   ;;  %s2034_s5 = inlined_call_operand.hbm [shape: f32[32,32], index: 5, kind: input, shape index: {}]   ;;  %s2035_s6 = inlined_call_operand.vmem [shape: f32[1,32], index: 6, kind: input, shape index: {}]   ;;  %s2036_s7 = inlined_call_operand.hbm [shape: f32[32,512], index: 7, kind: input, shape index: {}]   ;;  %s2037_s8 = inlined_call_operand.vmem [shape: f32[1,512], index: 8, kind: input, shape index: {}]   ;;  %s2038_s9 = inlined_call_operand.vmem [shape: f32[1,4], index: 9, kind: input, shape index: {}]   ;;  %s2039_s10 = inlined_call_operand.vmem [shape: f32[1,4], index: 10, kind: input, shape index: {}]   ;;  %s2040_s11 = inlined_call_operand.hbm [shape: f32[16,512], index: 11, kind: output, shape index: {0}]   ;;  %s2041_s12 = inlined_call_operand.vmem [shape: f32[16,4], index: 12, kind: output, shape index: {1}]  }
   0x1   :  { %2046 = sst [smem:[#allocation16_spill]] %s2030_s1 }
   0x2   :  { %2047 = sst [smem:[#allocation17_spill]] %s2038_s9 }
   0x3   :  { %2048 = sst [smem:[#allocation18_spill]] %s2039_s10 }
   0x4   :  { %2049 = sst [smem:[#allocation19_spill]] %s2040_s11 }
   0x5   :  { %2050 = sst [smem:[#allocation20_spill]] %s2041_s12 }
   0x6   :  { %18 = vsyncpa [#allocation3], 0 }
   0x7   :  { %20 = vsyncpa [#allocation3 + $0x1], 0 }
   0x8   :  { %21 = vsyncpa [#allocation6], 0 }
   0x9   :  { %22 = vsyncpa [#allocation9], 0 }
   0xa   :  { %23 = vsyncpa [#allocation4], 0 }
   0xb   :  { %25 = vsyncpa [#allocation4 + $0x1], 0  ;;  %s1702_s21 = smov 0   ;;  %s1704_s22 = smov 0  }
   0xc   :  { %s1706_s23 = smov 0   ;;  %s1708_s24 = smov 0  }
   0xd LB: > { %s1624_s25 = smov [#allocation5]   ;;  %s1723_s27 = sadd.s32 4294967295, %s1622_s24   ;;  %s1622_s24 = sphi %s1708_s24, %s2076_s24   ;;  %s1618_s23 = sphi %s1706_s23, %s2075_s23   ;;  %s1614_s22 = sphi %s1704_s22, %s2074_s22   ;;  %s1610_s21 = sphi %s1702_s21, %s2073_s21  }
   0xe   : > { %s336_s26 = sshll.u32 %s1624_s25, 4  ;;  %p1198_p0 = scmp.ge.s32.totalorder %s1622_s24, 1  ;;  %s1728_s26 = int_to_ptr.vmem [resolvable:$true] %s336_s26 }
   0xf   : > { %p2043_p1 = scmp.eq.s32.totalorder %s1723_s27, 0  ;;  %p324_p2 = scmp.lt.s32.totalorder %s1622_s24, 3 }
  0x10   : > { %s1625_s29 = smov [#allocation8]   ;;  %s1626_s14 = smov [#allocation7]  }
  0x11   : > { %p1730_p3 = pnand %p1198_p0, %p324_p2  ;;  %s368_s30 = sshll.u32 %s1625_s29, 4  ;;  %s1743_s30 = int_to_ptr.vmem [resolvable:$true] %s368_s30 }
  0x12   : > { %s352_s15 = sshll.u32 %s1626_s14, 4  ;;  %s2053_s1 = sld [smem:[#allocation16_spill]]  ;;  %s1745_s15 = int_to_ptr.vmem [resolvable:$true] %s352_s15 }
  0x13   : > { %s2051_s28 = scalar_select %p1730_p3, 1, 0 }
  0x14   : > { %p1332_p5 = pneg %p1730_p3 }
  0x16   : > { %p1739_p6 = pnand %p1332_p5, %p2043_p1 }
  0x18   : > { %s1406_s18 = scalar_lea.hbm %s2053_s1, 512  ;;  %p1755_p8 = pneg %p1739_p6 }
  0x19   : > { %p1407_p7 = scmp.ne.s32.totalorder %s2053_s1, %s1406_s18  ;;  %p1413_p11 = scmp.lt.u32.totalorder %s1406_s18, %s2053_s1 }
  0x1b   : > { %p1409_p9 = pnand %p1755_p8, %p1407_p7 }
  0x1d   : > { %p1410_p10 = pneg %p1409_p9 }
  0x1f   : > { %p1415_p12 = pnand %p1413_p11, %p1410_p10 }
  0x21   : > { %1418 = shalt.err (!%p1415_p12)
}
  0x22   : > { %s1419_s16 = scalar_lea.vmem %s1728_s26, 512  ;;  %p1427_p5 = scmp.lt.s32.totalorder %s1728_s26, %s1728_s26 }
  0x23   : > { %p1420_p13 = scmp.ne.s32.totalorder %s1728_s26, %s1419_s16  ;;  %p1428_p4 = scmp.lt.s32.totalorder %s1419_s16, %s1419_s16 }
  0x25   : > { %p1422_p0 = pnand %p1420_p13, %p1755_p8  ;;  %p1429_p7 = por %p1428_p4, %p1427_p5 }
  0x27   : > { %p1423_p2 = pneg %p1422_p0 }
  0x29   : > { %p1430_p9 = pnand %p1429_p7, %p1423_p2 }
  0x2b   : > { %1433 = shalt.err (!%p1430_p9)
}
  0x2c   : > { %s1627_s17 = smov 128   ;;  %s1628_s18 = smov 8  }
  0x2d   : > { %1335 = dma.hbm_to_vmem [thread:$0]  (!%p1739_p6), %s2053_s1, 512, %s1728_s26, [#allocation6], %s1627_s17, %s1627_s17, %s1628_s18  }
  0x2e   : > { %s1434_s16 = scalar_lea.hbm %s2034_s5, 512 }
  0x2f   : > { %p1435_p4 = scmp.ne.s32.totalorder %s2034_s5, %s1434_s16  ;;  %p1441_p12 = scmp.lt.u32.totalorder %s1434_s16, %s2034_s5 }
  0x31   : > { %p1437_p10 = pnand %p1435_p4, %p1755_p8 }
  0x33   : > { %p1438_p11 = pneg %p1437_p10 }
  0x35   : > { %p1443_p13 = pnand %p1441_p12, %p1438_p11 }
  0x37   : > { %1446 = shalt.err (!%p1443_p13)
}
  0x38   : > { %s1447_s26 = scalar_lea.vmem %s1743_s30, 512  ;;  %p1455_p7 = scmp.lt.s32.totalorder %s1743_s30, %s1743_s30 }
  0x39   : > { %p1448_p0 = scmp.ne.s32.totalorder %s1743_s30, %s1447_s26  ;;  %p1456_p9 = scmp.lt.s32.totalorder %s1447_s26, %s1447_s26 }
  0x3b   : > { %p1450_p2 = pnand %p1448_p0, %p1755_p8  ;;  %p1457_p4 = por %p1456_p9, %p1455_p7 }
  0x3d   : > { %p1451_p5 = pneg %p1450_p2 }
  0x3f   : > { %p1458_p10 = pnand %p1457_p4, %p1451_p5 }
  0x41   : > { %1461 = shalt.err (!%p1458_p10)
}
  0x42   : > { %1341 = dma.hbm_to_vmem [thread:$0]  (!%p1739_p6), %s2034_s5, 512, %s1743_s30, [#allocation9], %s1627_s17, %s1627_s17, %s1628_s18  }
  0x43   : > { %s1462_s19 = scalar_lea.hbm %s2032_s3, 512 }
  0x44   : > { %p1463_p11 = scmp.ne.s32.totalorder %s2032_s3, %s1462_s19  ;;  %p1469_p0 = scmp.lt.u32.totalorder %s1462_s19, %s2032_s3 }
  0x46   : > { %p1465_p12 = pnand %p1463_p11, %p1755_p8 }
  0x48   : > { %p1466_p13 = pneg %p1465_p12 }
  0x4a   : > { %p1471_p2 = pnand %p1469_p0, %p1466_p13 }
  0x4c   : > { %1474 = shalt.err (!%p1471_p2)
}
  0x4d   : > { %s1475_s30 = scalar_lea.vmem %s1745_s15, 512  ;;  %p1483_p4 = scmp.lt.s32.totalorder %s1745_s15, %s1745_s15 }
  0x4e   : > { %p1476_p5 = scmp.ne.s32.totalorder %s1745_s15, %s1475_s30  ;;  %p1484_p10 = scmp.lt.s32.totalorder %s1475_s30, %s1475_s30 }
  0x50   : > { %p1478_p7 = pnand %p1476_p5, %p1755_p8  ;;  %p1485_p11 = por %p1484_p10, %p1483_p4 }
  0x52   : > { %p1479_p9 = pneg %p1478_p7 }
  0x54   : > { %p1486_p12 = pnand %p1485_p11, %p1479_p9 }
  0x56   : > { %1489 = shalt.err (!%p1486_p12)
}
  0x57   : > { %1338 = dma.hbm_to_vmem [thread:$0]  (!%p1739_p6), %s2032_s3, 512, %s1745_s15, [#allocation6], %s1627_s17, %s1627_s17, %s1628_s18  }
  0x58   : > { %s1629_s10 = smov [#allocation10]   ;;  %s1490_s20 = scalar_lea.hbm %s2036_s7, 2048 }
  0x59   : > { %s384_s11 = sshll.u32 %s1629_s10, 4  ;;  %p1491_p13 = scmp.ne.s32.totalorder %s2036_s7, %s1490_s20  ;;  %s385_s11 = int_to_ptr.vmem [resolvable:$true] %s384_s11 }
  0x5a   : > { %p1497_p5 = scmp.lt.u32.totalorder %s1490_s20, %s2036_s7 }
  0x5b   : > { %p1493_p0 = pnand %p1491_p13, %p1755_p8 }
  0x5d   : > { %p1494_p2 = pneg %p1493_p0 }
  0x5f   : > { %p1499_p7 = pnand %p1497_p5, %p1494_p2 }
  0x61   : > { %1502 = shalt.err (!%p1499_p7)
}
  0x62   : > { %s1503_s15 = scalar_lea.vmem %s385_s11, 2048  ;;  %p1511_p11 = scmp.lt.s32.totalorder %s385_s11, %s385_s11 }
  0x63   : > { %p1504_p9 = scmp.ne.s32.totalorder %s385_s11, %s1503_s15  ;;  %p1512_p12 = scmp.lt.s32.totalorder %s1503_s15, %s1503_s15 }
  0x65   : > { %p1506_p4 = pnand %p1504_p9, %p1755_p8  ;;  %p1513_p1 = por %p1512_p12, %p1511_p11 }
  0x67   : > { %p1507_p10 = pneg %p1506_p4 }
  0x69   : > { %p1514_p3 = pnand %p1513_p1, %p1507_p10 }
  0x6b   : > { %1517 = shalt.err (!%p1514_p3)
}
  0x6c   : > { %s1630_s17 = smov 512   ;;  %s1631_s25 = smov 32  }
  0x6d   : > { %1344 = dma.hbm_to_vmem [thread:$0]  (!%p1739_p6), %s2036_s7, 2048, %s385_s11, [#allocation9], %s1630_s17, %s1630_s17, %s1631_s25  }
  0x6e   : > { %s1197_s9 = sadd.s32 4294967294, %s1622_s24   ;;  %s1851_s10 = sadd.s32 1, %s1622_s24  }
  0x6f   : > { %s35_s12 = ssub.s32 %s1622_s24, %s1851_s10  ;;  %s38_s19 = sadd.s32 1, %s1618_s23 }
  0x70   : > { %p36_p1 = scmp.eq.s32.totalorder %s35_s12, 0  ;;  %p45_p3 = scmp.ne.s32.totalorder %s1618_s23, %s1614_s22 }
  0x71   : > { %p46_p8 = scmp.eq.s32.totalorder %s1622_s24, 0  ;;  %p51_p13 = scmp.ne.s32.totalorder %s1614_s22, %s1610_s21 }
  0x72   : > { %s1862_s20 = scalar_select %p36_p1, %s1618_s23, %s38_s19  }
  0x73   : > { %p1864_p0 = por %p46_p8, %p45_p3  ;;  %p2056_p2 = scmp.eq.s32.totalorder %s1723_s27, 0 }
  0x74   : > { %p285_p5 = scmp.eq.s32.totalorder %s1723_s27, 1  ;;  %p291_p7 = scmp.eq.s32.totalorder %s1197_s9, 1 }
  0x75   : > { %p1870_p6 = por %p2056_p2, %p51_p13  ;;  %p1357_p9 = scmp.lt.s32.totalorder %s1622_s24, 2 }
  0x76   : > { %s407_s29 = sand.u32 1, %s1618_s23   ;;  %p1877_p4 = por %p285_p5, %p45_p3 }
  0x77   : > { %p1881_p10 = por %p291_p7, %p51_p13  ;;  %s1204_s30 = sshll.u32 %s407_s29, 3 }
  0x78   : > { %s2058_s14 = scalar_select %p1877_p4, 1, 0 }
  0x79   : > { %s2059_s16 = scalar_select %p1881_p10, 1, 0 }
  0x7a   : > { %s1205_s15 = sshll.u32 %s1622_s24, 7  ;;  %s411_s26 = scalar_lea.vmem [#allocation2], %s1204_s30 }
  0x7b   : > { %s1889_s18 = scalar_lea.hbm %s2029_s0, %s1205_s15  ;;  %s418_s9 = sshll.u32 %s411_s26, 4  ;;  %s1891_s9 = int_to_ptr.vmem [resolvable:$true] %s418_s9 }
  0x7c   : > { %p1895_p11 = pnand %p1357_p9, %p1864_p0  ;;  %s408_s19 = scalar_lea.sflag [#allocation3], %s407_s29 }
  0x7d   : > { %s1518_s1 = scalar_lea.hbm %s1889_s18, 128  ;;  %s1523_s17 = scalar_lea.hbm %s2029_s0, 256 }
  0x7e   : > { %p1519_p12 = scmp.ne.s32.totalorder %s1889_s18, %s1518_s1  ;;  %p1520_p1 = pneg %p1895_p11 }
  0x7f   : > { %p1524_p13 = scmp.lt.u32.totalorder %s1889_s18, %s2029_s0  ;;  %p1525_p0 = scmp.lt.u32.totalorder %s1523_s17, %s1518_s1 }
  0x80   : > { %p1521_p3 = pnand %p1520_p1, %p1519_p12  ;;  %p1527_p5 = scmp.lt.u32.totalorder %s1518_s1, %s1889_s18 }
  0x81   : > { %p1526_p2 = por %p1525_p0, %p1524_p13 }
  0x82   : > { %p1522_p8 = pneg %p1521_p3 }
  0x83   : > { %p1528_p7 = por %p1527_p5, %p1526_p2 }
  0x85   : > { %p1529_p9 = pnand %p1528_p7, %p1522_p8 }
  0x87   : > { %1532 = shalt.err (!%p1529_p9)
}
  0x88   : > { %s1533_s29 = scalar_lea.vmem %s1891_s9, 128  ;;  %s1632_s26 = smov [#allocation2]  }
  0x89   : > { %p1534_p12 = scmp.ne.s32.totalorder %s1891_s9, %s1533_s29  ;;  %s1538_s30 = sshll.u32 %s1632_s26, 4  ;;  %s1539_s30 = int_to_ptr.vmem [resolvable:$false] %s1538_s30 }
  0x8a   : > { %s1540_s15 = scalar_lea.vmem %s1539_s30, 256  ;;  %p1541_p4 = scmp.lt.s32.totalorder %s1891_s9, %s1539_s30 }
  0x8b   : > { %p1536_p3 = pnand %p1534_p12, %p1520_p1  ;;  %p1542_p13 = scmp.lt.s32.totalorder %s1540_s15, %s1533_s29 }
  0x8d   : > { %p1537_p10 = pneg %p1536_p3  ;;  %p1543_p0 = por %p1542_p13, %p1541_p4 }
  0x8f   : > { %p1544_p2 = pnand %p1543_p0, %p1537_p10 }
  0x91   : > { %1547 = shalt.err (!%p1544_p2)
}
  0x92   : > { %1348 = dma.hbm_to_vmem [thread:$0]  (!%p1895_p11), %s1889_s18, 128, %s1891_s9, %s408_s19  }
  0x93   : > { %p2061_p8 = scmp.ne.s32.totalorder %s2051_s28, 0 }
  0x94   : > { %s1927_s1 = sand.u32 (!%p2061_p8), 1, %s1614_s22  }
  0x95   : > { %427 = sbr.rel (%p2061_p8) target bundleno = 1487 (0x5cf), region = 64  ;;  %s1207_s17 = sshll.u32 (!%p2061_p8), %s1927_s1, 3 }
  0x96   : > { %s430_s13 = scalar_lea.sflag (!%p2061_p8), [#allocation3], %s1927_s1  ;;  %s433_s25 = scalar_lea.vmem (!%p2061_p8), [#allocation2], %s1207_s17 }
  0x9c   : > { %1593 = dma.done.wait (%p1870_p6), %s430_s13, 128  }
  0x9d   : > { %1595 = vsyncadd (%p1870_p6), %s430_s13, 4294967168  ;;  %p2062_p4 = scmp.eq.s32.totalorder %s1723_s27, 0 }
  0x9f   : > { %1597 = dma.done.wait (%p2062_p4), [#allocation6], 1024   ;;  %p2063_p10 = pmov %p2062_p4 }
  0xa0   : > { %p2064_p11 = pmov %p2062_p4 }
  0xa1   : > { %1599 = vsyncadd (%p2063_p10), [#allocation6], 4294966272 }
  0xa2   : > { %1601 = dma.done.wait (%p2064_p11), [#allocation9], 2560   ;;  %p2065_p1 = pmov %p2062_p4 }
  0xa3   : > { %v1633_v0 = vmov 0.0|0.0   ;;  %vm1634_vm0 = vmmov 0   ;;  %v1635_v1 = vmov 0.0   ;;  %v499_v2 = vld [vmem:[#allocation5] sm:$0xff]  ;;  %v500_v3 = vld [vmem:[#allocation5 + $0x8] sm:$0xff]  ;;  %v501_v4 = vld [vmem:[#allocation5 + $0x10] sm:$0xff]  ;;  %v772_v59 = vlaneseq }
  0xa4   : > { %1603 = vsyncadd (%p2065_p1), [#allocation9], 4294964736  ;;  %1278 = vmatprep.subr.bf16.mxu0 %v1633_v0  ;;  %1253 = vmatprep.mubr.msk.f32.mxu0 %vm1634_vm0, %v1635_v1  ;;  %v1279_v5 = vpack.c.bf16 %v500_v3, %v499_v2  ;;  %v502_v6 = vld [vmem:[#allocation5 + $0x18] sm:$0xff]  ;;  %v585_v7 = vld [vmem:[#allocation7] sm:$0xff]  ;;  %vm510_vm1 = vcmask 261120   ;;  %s1212_s30 = sshll.u32 %s1927_s1, 5 }
  0xa5   : > { %1284 = vmatprep.subr.bf16.mxu1 %v1633_v0  ;;  %1264 = vmatprep.mubr.msk.f32.mxu1 %vm1634_vm0, %v1635_v1  ;;  %v586_v8 = vld [vmem:[#allocation7 + $0x8] sm:$0xff]  ;;  %v1282_v9 = vpack.c.bf16 %v502_v6, %v501_v4  ;;  %v498_v11 = vld [vmem:[%s433_s25] sm:$0xff]  ;;  %v670_v15 = vld [vmem:[#allocation8] sm:$0xff]  ;;  %v773_v60 = vshrl.u32 %v772_v59, 7  ;;  %s1969_s15 = scalar_lea.vmem [#allocation11], %s1212_s30  ;;  %s1229_s17 = sshll.u32 %s1723_s27, 9 }
  0xa6   : > { %1280 = vmatpush3.bf16.msra.mxu0 %v1279_v5  ;;  %v1285_v10 = vpack.c.bf16 %v586_v8, %v585_v7  ;;  %v587_v12 = vld [vmem:[#allocation7 + $0x10] sm:$0xff]  ;;  %v588_v13 = vld [vmem:[#allocation7 + $0x18] sm:$0xff]  ;;  %v671_v16 = vld [vmem:[#allocation8 + $0x8] sm:$0xff]  ;;  %s1062_s13 = sshll.u32 %s1969_s15, 4  ;;  %s2066_s11 = sld [smem:[#allocation19_spill]]  ;;  %s1063_s13 = int_to_ptr.vmem [resolvable:$true] %s1062_s13 }
  0xa7   : > { %1281 = vmatprep.subr.bf16.mxu0 %v1633_v0  ;;  %v1288_v14 = vpack.c.bf16 %v588_v13, %v587_v12  ;;  %v1291_v17 = vpack.c.bf16 %v671_v16, %v670_v15  ;;  %v1214_v18 = vld [vmem:[%s2031_s2] ss:$0 sm:$0xff]  ;;  %v673_v24 = vld [vmem:[#allocation8 + $0x18] sm:$0xff]  ;;  %v755_v26 = vld [vmem:[#allocation10 + $0x8] sm:$0xff]  ;;  %v774_v61 = vsub.s32 0, %v773_v60  ;;  %v782_v62 = vsub.s32 2, %v773_v60 }
  0xa8   : > { %1286 = vmatpush3.bf16.msra.mxu1 %v1285_v10  ;;  %v672_v23 = vld [vmem:[#allocation8 + $0x10] sm:$0xff]  ;;  %v759_v27 = vld [vmem:[#allocation10 + $0x28] sm:$0xff]  ;;  %v757_v28 = vld [vmem:[#allocation10 + $0x18] sm:$0xff]  ;;  %s1044_s9 = scalar_lea.sflag [#allocation4], %s1927_s1  ;;  %s1548_s12 = scalar_lea.vmem %s1063_s13, 512 }
  0xa9   : > { %1287 = vmatprep.subr.bf16.mxu1 %v1633_v0  ;;  %v1294_v25 = vpack.c.bf16 %v673_v24, %v672_v23  ;;  %v1296_v29 = vpack.c.bf16 %v759_v27, %v755_v26  ;;  %v761_v30 = vld [vmem:[#allocation10 + $0x38] sm:$0xff]  ;;  %v754_v31 = vld [vmem:[#allocation10] sm:$0xff]  ;;  %v763_v35 = vld [vmem:[#allocation10 + $0x48] sm:$0xff]  ;;  %p1549_p6 = scmp.ne.s32.totalorder %s1063_s13, %s1548_s12  ;;  %p2067_p5 = scmp.ne.s32.totalorder %s2058_s14, 0 }
  0xaa   : > { %1283 = vmatpush3.bf16.msra.mxu0 %v1282_v9  ;;  %v758_v32 = vld [vmem:[#allocation10 + $0x20] sm:$0xff]  ;;  %v1304_v33 = vpack.c.bf16 %v761_v30, %v757_v28  ;;  %v767_v36 = vld [vmem:[#allocation10 + $0x68] sm:$0xff]  ;;  %v1216_v38 = vld [vmem:[%s2033_s4] ss:$0 sm:$0xff]  ;;  %s1636_s19 = smov [#allocation11]  }
  0xab   : > { %1290 = vmatprep.subr.bf16.mxu0 %v1633_v0  ;;  %v1298_v34 = vpack.c.bf16 %v758_v32, %v754_v31  ;;  %v1300_v37 = vpack.c.bf16 %v767_v36, %v763_v35  ;;  %v756_v39 = vld [vmem:[#allocation10 + $0x10] sm:$0xff]  ;;  %v765_v42 = vld [vmem:[#allocation10 + $0x58] sm:$0xff]  ;;  %v762_v49 = vld [vmem:[#allocation10 + $0x40] sm:$0xff]  ;;  %p1550_p7 = pnand %p1549_p6, %p2067_p5  ;;  %s1552_s29 = sshll.u32 %s1636_s19, 4  ;;  %s1553_s29 = int_to_ptr.vmem [resolvable:$false] %s1552_s29 }
  0xac   : > { %1289 = vmatpush3.bf16.msra.mxu1 %v1288_v14  ;;  %v760_v40 = vld [vmem:[#allocation10 + $0x30] sm:$0xff]  ;;  %v769_v43 = vld [vmem:[#allocation10 + $0x78] sm:$0xff]  ;;  %v766_v50 = vld [vmem:[#allocation10 + $0x60] sm:$0xff]  ;;  %v938_v14 = vand.u32 127, %v772_v59  ;;  %s1980_s18 = scalar_lea.hbm %s2066_s11, %s1229_s17  ;;  %s1554_s26 = scalar_lea.vmem %s1553_s29, 1024 }
  0xad   : > { %1254 = vmatmul.mubr.msk.f32.vlgmr.msra.gmra.mrb[0].mxu0 %vm510_vm1, %v498_v11  ;;  %1297 = vmatprep.subr.bf16.mxu1 %v1296_v29  ;;  %v1306_v46 = vpack.c.bf16 %v760_v40, %v756_v39  ;;  %v1308_v48 = vpack.c.bf16 %v769_v43, %v765_v42  ;;  %v764_v51 = vld [vmem:[#allocation10 + $0x50] sm:$0xff]  ;;  %v1302_v52 = vpack.c.bf16 %v766_v50, %v762_v49  ;;  %p1551_p9 = pneg %p1550_p7  ;;  %p1555_p12 = scmp.lt.s32.totalorder %s1063_s13, %s1553_s29 }
  0xae   : > { %1275 = vmatprep.mubr.msk.f32.mxu0 %vm1634_vm0, %v1635_v1  ;;  %1292 = vmatpush3.bf16.msra.mxu0 %v1291_v17  ;;  %v768_v53 = vld [vmem:[#allocation10 + $0x70] sm:$0xff]  ;;  %p1556_p3 = scmp.lt.s32.totalorder %s1554_s26, %s1548_s12 }
  0xaf   : > { %1293 = vmatprep.subr.bf16.mxu0 %v1633_v0  ;;  %v1310_v54 = vpack.c.bf16 %v768_v53, %v764_v51  ;;  %v1218_v55 = vld [vmem:[%s2035_s6] ss:$0 sm:$0xff]  ;;  %v778_v0 = vsub.s32 1, %v773_v60 }
  0xb0   : > { %v770_v63 = vld [vmem:[%s2037_s8] sm:$0xf]  ;;  %p1557_p13 = por %p1556_p3, %p1555_p12 }
  0xb1   : > { %v775_v2 = vrot.slane %v770_v63, %v774_v61  ;;  %v783_v3 = vrot.slane %v770_v63, %v782_v62  ;;  %v779_v4 = vrot.slane %v770_v63, %v778_v0 }
  0xb2   : > { %1295 = vmatpush3.bf16.msra.mxu0 %v1294_v25  ;;  %p1558_p0 = pnand %p1557_p13, %p1551_p9 }
  0xb3   : > { %1305 = vmatprep.subr.bf16.mxu0 %v1304_v33 }
 0x180   : > { %v580_v19 = vpop.f32.mrb[0].mxu0 }
 0x181   : > { %v581_v20 = vadd.f32 %v1214_v18, %v580_v19  ;;  %v1255_v21 = vpop.f32.mrb[1].mxu0 }
 0x183   : > { %v584_v22 = vmax.f32 %v581_v20, 0.0 }
 0x185   : > { %1265 = vmatmul.mubr.msk.f32.vlgmr.msra.gmra.mrb[0].mxu1 %vm510_vm1, %v584_v22 }
 0x186   : > { %859 = vmatprep.mubr.f32.mxu1 %v1635_v1  ;;  %1299 = vmatpush1.bf16.msra.mxu1 %v1298_v34 }
 0x187   : > { %1301 = vmatprep.subr.bf16.mxu1 %v1300_v37 }
 0x18a   : > { %1303 = vmatpush1.bf16.msra.mxu1 %v1302_v52 }
 0x258   : > { %v665_v41 = vpop.f32.mrb[0].mxu1 }
 0x259   : > { %v666_v44 = vadd.f32 %v1216_v38, %v665_v41  ;;  %v1266_v45 = vpop.f32.mrb[1].mxu1 }
 0x25b   : > { %v669_v47 = vmax.f32 %v666_v44, 0.0 }
 0x25d   : > { %1276 = vmatmul.mubr.msk.f32.vlgmr.msra.gmra.mrb[2].mxu0 %vm510_vm1, %v669_v47 }
 0x25e   : > { %1307 = vmatpush1.bf16.msra.mxu0 %v1306_v46  ;;  %930 = vmatprep.mubr.f32.mxu0 %v1635_v1  ;;  %v786_v1 = vsub.s32 3, %v773_v60 }
 0x25f   : > { %1309 = vmatprep.subr.bf16.mxu0 %v1308_v48 }
 0x260   : > { %v787_v5 = vrot.slane %v770_v63, %v786_v1 }
 0x262   : > { %1311 = vmatpush1.bf16.msra.mxu0 %v1310_v54 }
 0x330   : > { %v750_v56 = vpop.f32.mrb[2].mxu0 }
 0x331   : > { %v751_v57 = vadd.f32 %v1218_v55, %v750_v56  ;;  %v1277_v58 = vpop.f32.mrb[3].mxu0 }
 0x333   : > { %1220 = vmatmul.mubr.msk.f32.vlgmr.msra.gmra.mrb[2].mxu1 %vm510_vm1, %v751_v57  ;;  %1221 = vmatmul.mubr.msk.f32.vlgmr.msra.gmra.mrb[4].mxu0 %vm510_vm1, %v751_v57 }
 0x406   : > { %v861_v6 = vpop.f32.mrb[2].mxu1  ;;  %v932_v7 = vpop.f32.mrb[4].mxu0 }
 0x407   : > { %v862_v8 = vadd.f32 %v861_v6, %v775_v2  ;;  %v933_v9 = vadd.f32 %v932_v7, %v783_v3  ;;  %v863_v10 = vpop.f32.mrb[3].mxu1  ;;  %v934_v11 = vpop.f32.mrb[5].mxu0 }
 0x408   : > { %v864_v12 = vadd.f32 %v863_v10, %v779_v4  ;;  %v935_v13 = vadd.f32 %v934_v11, %v787_v5 }
 0x409   : > { %1039 = vst [vmem:[%s1969_s15] sm:$0xff] %v862_v8  ;;  %1041 = vst [vmem:[%s1969_s15 + $0x10] sm:$0xff] %v933_v9  ;;  %939 = vmax.xlane.f32.xlu0 %v862_v8  ;;  %977 = vmax.xlane.f32.xlu1 %v933_v9 }
 0x40a   : > { %1040 = vst [vmem:[%s1969_s15 + $0x8] sm:$0xff] %v864_v12  ;;  %1042 = vst [vmem:[%s1969_s15 + $0x18] sm:$0xff] %v935_v13 }
 0x40d   : > { %958 = vmax.xlane.f32.xlu0 %v864_v12  ;;  %996 = vmax.xlane.f32.xlu1 %v935_v13 }
 0x496   : > { %v940_v15 = vpop.xlane.xlu0 %939  ;;  %v978_v16 = vpop.xlane.xlu1 %977 }
 0x497   : > { %vm941_vm2 = vcmp.eq.f32.partialorder %v862_v8, %v940_v15  ;;  %vm979_vm3 = vcmp.eq.f32.partialorder %v933_v9, %v978_v16 }
 0x498   : > { %v942_v17 = vsel %vm941_vm2, %v938_v14, 128  ;;  %v980_v18 = vsel %vm979_vm3, %v938_v14, 128 }
 0x499   : > { %v944_v19 = vshra.s32 %v942_v17, 16  ;;  %v982_v23 = vshra.s32 %v980_v18, 16  ;;  %v943_v31 = vand.u32 65535, %v942_v17  ;;  %v981_v32 = vand.u32 65535, %v980_v18 }
 0x49a   : > { %v959_v20 = vpop.xlane.xlu0 %958  ;;  %v997_v21 = vpop.xlane.xlu1 %996 }
 0x49b   : > { %vm960_vm4 = vcmp.eq.f32.partialorder %v864_v12, %v959_v20  ;;  %vm998_vm5 = vcmp.eq.f32.partialorder %v935_v13, %v997_v21  ;;  %v946_v22 = vcvt.s32.f32 %v944_v19  ;;  %v984_v28 = vcvt.s32.f32 %v982_v23 }
 0x49c   : > { %v961_v24 = vsel %vm960_vm4, %v938_v14, 128  ;;  %v999_v25 = vsel %vm998_vm5, %v938_v14, 128  ;;  %v945_v35 = vcvt.s32.f32 %v943_v31  ;;  %v983_v40 = vcvt.s32.f32 %v981_v32 }
 0x49d   : > { %947 = vmin.xlane.f32.xlu0 %v946_v22  ;;  %v963_v26 = vshra.s32 %v961_v24, 16  ;;  %v1001_v29 = vshra.s32 %v999_v25, 16  ;;  %v962_v33 = vand.u32 65535, %v961_v24  ;;  %v1000_v37 = vand.u32 65535, %v999_v25 }
 0x49f   : > { %v965_v27 = vcvt.s32.f32 %v963_v26  ;;  %v1003_v30 = vcvt.s32.f32 %v1001_v29  ;;  %v964_v41 = vcvt.s32.f32 %v962_v33  ;;  %v1002_v45 = vcvt.s32.f32 %v1000_v37 }
 0x4a1   : > { %966 = vmin.xlane.f32.xlu1 %v965_v27  ;;  %985 = vmin.xlane.f32.xlu0 %v984_v28 }
 0x4a5   : > { %1004 = vmin.xlane.f32.xlu1 %v1003_v30 }
 0x52a   : > { %v948_v34 = vpop.xlane.xlu0 %947 }
 0x52b   : > { %vm949_vm6 = vcmp.eq.f32.partialorder %v946_v22, %v948_v34 }
 0x52c   : > { %v950_v36 = vsel %vm949_vm6, %v945_v35, inf }
 0x52d   : > { %951 = vmin.xlane.f32.xlu0 %v950_v36 }
 0x52e   : > { %v986_v38 = vpop.xlane.xlu0 %985  ;;  %v967_v39 = vpop.xlane.xlu1 %966 }
 0x52f   : > { %vm987_vm7 = vcmp.eq.f32.partialorder %v984_v28, %v986_v38  ;;  %vm968_vm8 = vcmp.eq.f32.partialorder %v965_v27, %v967_v39 }
 0x530   : > { %v988_v42 = vsel %vm987_vm7, %v983_v40, inf  ;;  %v969_v43 = vsel %vm968_vm8, %v964_v41, inf }
 0x531   : > { %989 = vmin.xlane.f32.xlu0 %v988_v42  ;;  %970 = vmin.xlane.f32.xlu1 %v969_v43 }
 0x532   : > { %v1005_v44 = vpop.xlane.xlu1 %1004 }
 0x533   : > { %vm1006_vm9 = vcmp.eq.f32.partialorder %v1003_v30, %v1005_v44 }
 0x534   : > { %v1007_v46 = vsel %vm1006_vm9, %v1002_v45, inf }
 0x535   : > { %1008 = vmin.xlane.f32.xlu1 %v1007_v46 }
 0x536   : > { %1561 = shalt.err (!%p1558_p0)
}
 0x537   : > { %s1562_s1 = scalar_lea.hbm %s1980_s18, 512  ;;  %s1566_s17 = scalar_lea.hbm %s2066_s11, 1024 }
 0x538   : > { %p1563_p2 = scmp.ne.s32.totalorder %s1980_s18, %s1562_s1  ;;  %p1567_p10 = scmp.lt.u32.totalorder %s1980_s18, %s2066_s11 }
 0x539   : > { %p1568_p11 = scmp.lt.u32.totalorder %s1566_s17, %s1562_s1  ;;  %p1570_p6 = scmp.lt.u32.totalorder %s1562_s1, %s1980_s18 }
 0x53a   : > { %p1564_p8 = pnand %p1563_p2, %p2067_p5 }
 0x53b   : > { %p1569_p1 = por %p1568_p11, %p1567_p10 }
 0x53c   : > { %p1565_p4 = pneg %p1564_p8 }
 0x53d   : > { %p1571_p7 = por %p1570_p6, %p1569_p1 }
 0x53f   : > { %p1572_p9 = pnand %p1571_p7, %p1565_p4 }
 0x541   : > { %1575 = shalt.err (!%p1572_p9)
}
 0x542   : > { %1330 = dma.vmem_to_hbm [thread:$0]  (%p2067_p5), %s1063_s13, 512, %s1980_s18, %s1044_s9   ;;  %v954_v47 = vcvt.f32.s32 %v948_v34  ;;  %v992_v48 = vcvt.f32.s32 %v986_v38  ;;  %v973_v49 = vcvt.f32.s32 %v967_v39  ;;  %v1011_v57 = vcvt.f32.s32 %v1005_v44 }
 0x543   : > { %p494_p12 = scmp.lt.s32.totalorder %s1723_s27, 1  ;;  %vm1015_vm10 = vcmask 7168   ;;  %vm1017_vm11 = vcmask 15360   ;;  %vm1019_vm12 = vcmask 23552   ;;  %s2068_s18 = sld [smem:[#allocation17_spill]]  ;;  %vm1037_vm13 = vcmask 31744  }
 0x544   : > { %v955_v52 = vshll.u32 %v954_v47, 16  ;;  %v993_v53 = vshll.u32 %v992_v48, 16  ;;  %v974_v54 = vshll.u32 %v973_v49, 16  ;;  %v1012_v0 = vshll.u32 %v1011_v57, 16  ;;  %s2069_s29 = sld [smem:[#allocation18_spill]]  ;;  %s2070_s30 = sld [smem:[#allocation20_spill]] }
 0x545   : > { %s2078_s27 = smov (!%p494_p12, %s1723_s27), 1 }
 0x546   : > { %s1213_s9 = sshll.u32 %s2078_s27, 3 }
 0x549   : > { %v1222_v7 = vld [vmem:[%s2068_s18] ss:$0 sm:$0xff] }
 0x54a   : > { %v1223_v10 = vld [vmem:[%s2069_s29] ss:$0 sm:$0xff]  ;;  %s497_s15 = scalar_lea.vmem %s2070_s30, %s1213_s9 }
 0x5ba   : > { %v952_v50 = vpop.xlane.xlu0 %951 }
 0x5bb   : > { %v953_v51 = vcvt.f32.s32 %v952_v50 }
 0x5bd   : > { %v956_v58 = vadd.s32 %v955_v52, %v953_v51 }
 0x5be   : > { %v990_v55 = vpop.xlane.xlu0 %989  ;;  %v971_v56 = vpop.xlane.xlu1 %970 }
 0x5bf   : > { %v991_v59 = vcvt.f32.s32 %v990_v55  ;;  %v972_v60 = vcvt.f32.s32 %v971_v56  ;;  %v957_v1 = vcvt.s32.f32 %v956_v58 }
 0x5c1   : > { %v994_v61 = vadd.s32 %v993_v53, %v991_v59  ;;  %v975_v62 = vadd.s32 %v974_v54, %v972_v60 }
 0x5c2   : > { %v1009_v63 = vpop.xlane.xlu1 %1008 }
 0x5c3   : > { %v976_v2 = vcvt.s32.f32 %v975_v62  ;;  %v1010_v3 = vcvt.f32.s32 %v1009_v63  ;;  %v995_v4 = vcvt.s32.f32 %v994_v61 }
 0x5c5   : > { %v1016_v5 = vsel %vm1015_vm10, %v957_v1, %v976_v2  ;;  %v1013_v6 = vadd.s32 %v1012_v0, %v1010_v3 }
 0x5c6   : > { %v1018_v9 = vsel %vm1017_vm11, %v1016_v5, %v995_v4 }
 0x5c7   : > { %v1014_v8 = vcvt.s32.f32 %v1013_v6 }
 0x5c9   : > { %v1020_v11 = vsel %vm1019_vm12, %v1018_v9, %v1014_v8 }
 0x5ca   : > { %v1028_v12 = vmul.f32 %v1222_v7, %v1020_v11 }
 0x5cc   : > { %v1036_v13 = vadd.f32 %v1223_v10, %v1028_v12 }
 0x5ce   : > { %1038 = vst.msk [vmem:[%s497_s15] sm:$0xff] %vm1037_vm13, %v1036_v13 }
 0x5cf PF: > { %s1077_s17 = sand.u32 1, %s1610_s21   ;;  %p2071_p5 = scmp.ne.s32.totalorder %s2059_s16, 0 }
 0x5d0   : > { %p2072_p3 = scmp.ge.s32.totalorder %s1622_s24, 2  ;;  %s1078_s27 = scalar_lea.sflag [#allocation4], %s1077_s17 }
 0x5d2   : > { %p1350_p13 = pnand %p2072_p3, %p2071_p5 }
 0x5d4   : > { %1605 = dma.done.wait (!%p1350_p13), %s1078_s27, 512  }
 0x5d5   : > { %1607 = vsyncadd (!%p1350_p13), %s1078_s27, 4294966784  ;;  %p28_p0 = scmp.ge.s32.totalorder %s1851_s10, 4   ;;  %s2073_s21 = smov %s1614_s22 }
 0x5d6   : > { %s2074_s22 = smov %s1618_s23  ;;  %s2075_s23 = smov %s1862_s20 }
 0x5d7   : > { %s2076_s24 = smov %s1851_s10  ;;  %30 = sbr.rel (!%p28_p0) target bundleno = 13 (0xd), region = 137 }
 0x5de   :  { %1090 = vsyncpa [#allocation3], 1 }
 0x5df   :  { %1092 = vsyncpa [#allocation3 + $0x1], 1 }
 0x5e0   :  { %1093 = vsyncpa [#allocation6], 1 }
 0x5e1   :  { %1094 = vsyncpa [#allocation9], 1 }
 0x5e2   :  { %1095 = vsyncpa [#allocation4], 1 }
 0x5e3   :  { %1097 = vsyncpa [#allocation4 + $0x1], 1 }

</bundles_post_ra>
